<compile_context>
chip_gen: v5e
topology: v5e:2x2
jax: 0.10.0
libtpu: 0.0.40
codegen_flags: <defaults>
</compile_context>

<pallas_src>
import functools

import jax
import jax.numpy as jnp
from jax import lax
from jax.experimental import pallas as pl
from jax.experimental.pallas import tpu as pltpu

_SMOOTH_NR = 1e-5          # MONAI DiceCELoss defaults
_SMOOTH_DR = 1e-5
_CAP = 32768.0             # "infinite" 1-D distance (CAP^2 ~ 1.07e9)
_HUGE = 3.0e38             # identity for the min-plus accumulator
_BIG = 1e9                 # used only by the pure-JAX reference
_VMEM_LIMIT = 32 * 1024 * 1024


def _round_up(n, m):
    return ((n + m - 1) // m) * m


def _pad_spatial(n):
    # Multiple of 8 (sublane / 8-row chunking); once large enough that lane
    # tiling matters, a multiple of 128 so lane-dense tiles always exist.
    return _round_up(n, 8) if n <= 256 else _round_up(n, 128)


def _pick_tile(n, cap):
    """Largest tile <= cap that divides n and is a multiple of 128 (else n).

    With the wrapper's padding rules the full-axis fallback is only reachable
    for small axes, so blocks always stay comfortably inside VMEM."""
    if n <= cap:
        return n
    t = (cap // 128) * 128
    while t >= 128:
        if n % t == 0:
            return t
        t -= 128
    return n


def _edt_lane_cap(r):
    # Keep in+out double-buffered (r, ts) f32 blocks around <= 12 MiB so the
    # default scoped-VMEM limits are safe on every generation (v5e/v6e/v7x).
    cap = (12 * 1024 * 1024) // (16 * r)
    return max(128, min(512, (cap // 128) * 128))


def _pick_row_block(r, ts):
    # Row block sized so the (RB, ts) f32 accumulator stays <= 16 vregs.
    lane_chunks = max(1, (ts + 127) // 128)
    cap = min(64, max(8, (128 // lane_chunks) // 8 * 8))
    if r <= cap:
        return r
    rb = cap
    while rb >= 8:
        if r % rb == 0:
            return rb
        rb -= 8
    return 8


# ----------------------------------------------------------------------------
# Exact foreground Euclidean distance transform (separable squared EDT).
#
# Pass 1 (scan): per column, squared distance along rows to the nearest
# background row, computed with a forward + backward running count (O(R*S)).
# Pass 2 (min-plus): out(r, s) = sqrt(min_k [ (r - k)^2 + g(k, s) ]) with the
# running min kept in vregs per output-row block.
# ----------------------------------------------------------------------------
def _edt_vert_kernel(src_ref, out_ref):
    R, S = src_ref.shape[1], src_ref.shape[2]

    def fwd(r, carry):
        row = src_ref[0, pl.ds(r, 1), :]                      # (1, S)
        d = jnp.where(row == 0, 0.0, jnp.minimum(carry + 1.0, _CAP))
        out_ref[0, pl.ds(r, 1), :] = d
        return d

    def bwd(i, carry):
        r = R - 1 - i
        row = src_ref[0, pl.ds(r, 1), :]
        d = jnp.where(row == 0, 0.0, jnp.minimum(carry + 1.0, _CAP))
        m = jnp.minimum(out_ref[0, pl.ds(r, 1), :], d)
        out_ref[0, pl.ds(r, 1), :] = m * m                    # squared distance
        return d

    init = jnp.full((1, S), _CAP, dtype=jnp.float32)
    lax.fori_loop(0, R, fwd, init)
    lax.fori_loop(0, R, bwd, init)


def _edt_vert(m):
    B, R, S = m.shape
    ts = _pick_tile(S, _edt_lane_cap(R))
    return pl.pallas_call(
        _edt_vert_kernel,
        out_shape=jax.ShapeDtypeStruct((B, R, S), jnp.float32),
        grid_spec=pltpu.PrefetchScalarGridSpec(
            num_scalar_prefetch=0,
            grid=(B, S // ts),
            in_specs=[pl.BlockSpec((1, R, ts), lambda b, s: (b, 0, s))],
            out_specs=pl.BlockSpec((1, R, ts), lambda b, s: (b, 0, s))),
        compiler_params=pltpu.CompilerParams(
            dimension_semantics=("parallel", "parallel"),
            vmem_limit_bytes=_VMEM_LIMIT),
    )(m)


def _edt_minplus_kernel(src_ref, out_ref, *, row_block):
    R, S = src_ref.shape[1], src_ref.shape[2]
    n_blocks = R // row_block
    n_k = R // 8

    @pl.loop(0, n_blocks)
    def _(blk):
        r0 = pl.multiple_of(blk * row_block, 8)
        rr = (r0 + lax.broadcasted_iota(jnp.int32, (row_block, 1), 0)
              ).astype(jnp.float32)                           # (RB, 1)

        def body(j, acc):
            k0 = pl.multiple_of(j * 8, 8)
            rows = src_ref[0, pl.ds(k0, 8), :]                # (8, S) full-sublane
            kf = (j * 8).astype(jnp.float32)
            for u in range(8):                                # unrolled -> ILP
                g = rows[u:u + 1, :]                          # (1, S)
                d = rr - (kf + float(u))                      # (RB, 1)
                acc = jnp.minimum(acc, d * d + g)             # (RB, S), in vregs
            return acc

        acc = lax.fori_loop(
            0, n_k, body, jnp.full((row_block, S), _HUGE, dtype=jnp.float32))
        out_ref[0, pl.ds(r0, row_block), :] = jnp.sqrt(acc)   # one store / block


def _edt_minplus(g):
    B, R, S = g.shape
    ts = _pick_tile(S, _edt_lane_cap(R))
    rb = _pick_row_block(R, ts)
    return pl.pallas_call(
        functools.partial(_edt_minplus_kernel, row_block=rb),
        out_shape=jax.ShapeDtypeStruct((B, R, S), jnp.float32),
        grid_spec=pltpu.PrefetchScalarGridSpec(
            num_scalar_prefetch=0,
            grid=(B, S // ts),
            in_specs=[pl.BlockSpec((1, R, ts), lambda b, s: (b, 0, s))],
            out_specs=pl.BlockSpec((1, R, ts), lambda b, s: (b, 0, s))),
        compiler_params=pltpu.CompilerParams(
            dimension_semantics=("parallel", "parallel"),
            vmem_limit_bytes=_VMEM_LIMIT),
    )(g)


def _compute_fg_dtm(y, H, W):
    """y: (B, 1, H, W) labels. Returns (B, 1, H*W) exact foreground EDT (f32)."""
    B = y.shape[0]
    m = y.reshape(B, H, W)
    Hp, Wp = _pad_spatial(H), _pad_spatial(W)
    if (Hp, Wp) != (H, W):
        # Pad with foreground (nonzero): padded pixels are never background, so
        # they cannot change any real pixel's distance -> EDT stays exact.
        m = jnp.pad(m, ((0, 0), (0, Hp - H), (0, Wp - W)), constant_values=1)
    g = _edt_vert(m)                                 # (B, Hp, Wp) vert. dist^2
    dt = _edt_minplus(jnp.swapaxes(g, 1, 2))         # (B, Wp, Hp) = EDT^T
    d = jnp.swapaxes(dt, 1, 2)[:, :H, :W]            # (B, H, W)
    # TODO(synk): an all-foreground mask (no background pixel anywhere) yields
    # ~_CAP here; scipy's behaviour for that degenerate input is not reproduced.
    return d.reshape(B, 1, H * W)


# ----------------------------------------------------------------------------
# Fused per-batch loss statistics, tiled over the flattened spatial axis which
# is reshaped to (8, M) so (8, TL) vreg tiles are fully occupied even for C<8.
# Emits one packed (1, 1, 4) row per batch element:
#   [sum_c dice_c, ce_sum, wl1_numerator, mask_sum]
# ----------------------------------------------------------------------------
def _loss_stats_kernel(x_ref, xd_ref, lab_ref, yd_ref, out_ref,
                       inter_ref, pred_ref, gt_ref, ce_ref, wnum_ref, msum_ref):
    t = pl.program_id(1)

    @pl.when(t == 0)
    def _():
        inter_ref[...] = jnp.zeros_like(inter_ref)
        pred_ref[...] = jnp.zeros_like(pred_ref)
        gt_ref[...] = jnp.zeros_like(gt_ref)
        ce_ref[...] = jnp.zeros_like(ce_ref)
        wnum_ref[...] = jnp.zeros_like(wnum_ref)
        msum_ref[...] = jnp.zeros_like(msum_ref)

    x = x_ref[0].astype(jnp.float32)        # (C, 8, TL) segmentation logits
    xd = xd_ref[0].astype(jnp.float32)      # (C, 8, TL) predicted distance map
    lab = lab_ref[0].astype(jnp.float32)    # (1, 8, TL) labels (-1 on padding)
    yd = yd_ref[0]                           # (1, 8, TL) ground-truth fg DTM

    cidx = lax.broadcasted_iota(jnp.int32, x.shape, 0).astype(jnp.float32)
    onehot = (lab == cidx).astype(jnp.float32)                 # (C, 8, TL)
    ox = onehot * x

    # --- Dice partial sums (MONAI DiceLoss defaults: no activation) ---
    inter_ref[...] += jnp.sum(ox, axis=2, keepdims=True)       # (C, 8, 1)
    pred_ref[...] += jnp.sum(x, axis=2, keepdims=True)
    gt_ref[...] += jnp.sum(onehot, axis=2, keepdims=True)

    # --- Cross entropy partial: sum over valid pixels of lse(x) - x[label] ---
    mx = jnp.max(x, axis=0, keepdims=True)                     # (1, 8, TL)
    lse = mx + jnp.log(jnp.sum(jnp.exp(x - mx), axis=0, keepdims=True))
    true_logit = jnp.sum(ox, axis=0, keepdims=True)
    valid = jnp.sum(onehot, axis=0, keepdims=True)             # 1 real / 0 pad
    ce_ref[...] += jnp.sum(valid * (lse - true_logit), axis=2, keepdims=True)

    # --- Weighted-L1 partials (mask = raw label values; 0 on padding) ---
    w = jnp.maximum(lab, 0.0)                                  # (1, 8, TL)
    sumc = jnp.sum(jnp.abs(xd - yd), axis=0, keepdims=True)    # sum over C
    wnum_ref[...] += jnp.sum(sumc * w, axis=2, keepdims=True)
    msum_ref[...] += jnp.sum(w, axis=2, keepdims=True)

    @pl.when(t == pl.num_programs(1) - 1)
    def _():
        inter = jnp.sum(inter_ref[...], axis=1, keepdims=True)   # (C, 1, 1)
        pred = jnp.sum(pred_ref[...], axis=1, keepdims=True)
        gt = jnp.sum(gt_ref[...], axis=1, keepdims=True)
        dice = 1.0 - (2.0 * inter + _SMOOTH_NR) / (pred + gt + _SMOOTH_DR)
        dice_sum = jnp.sum(dice, axis=0, keepdims=True)[0]       # (1, 1)
        ce = jnp.sum(ce_ref[...], axis=1, keepdims=True)[0]      # (1, 1)
        wnum = jnp.sum(wnum_ref[...], axis=1, keepdims=True)[0]
        msum = jnp.sum(msum_ref[...], axis=1, keepdims=True)[0]
        lane = lax.broadcasted_iota(jnp.int32, (1, 4), 1)
        out_ref[0] = (jnp.where(lane == 0, dice_sum, 0.0)
                      + jnp.where(lane == 1, ce, 0.0)
                      + jnp.where(lane == 2, wnum, 0.0)
                      + jnp.where(lane == 3, msum, 0.0))


# ----------------------------------------------------------------------------
# Wrapper: FGDTMloss.forward
# ----------------------------------------------------------------------------
def fgdtm_loss(outputs, outputs_dist, y, distance_map_weight):
    assert isinstance(distance_map_weight, float), "distance_map_weight is not a float"
    B, C, H, W = outputs.shape
    HW = H * W
    assert max(H, W) <= 4096, "f32 squared distances are only exact up to 4096"

    y_dist = _compute_fg_dtm(y, H, W)            # (B, 1, HW) f32, same for all C

    # Reshape the flattened spatial axis to (8, M) for full sublane occupancy;
    # pad with zero-contribution values so tiles stay lane-dense 128-multiples.
    tl = min(1024, _round_up(max(1, -(-HW // 8)), 128))
    hwp = _round_up(HW, 8 * tl)
    m = hwp // 8

    def prep(a, nch, pad_value):
        a = a.reshape(B, nch, HW)
        if hwp != HW:
            a = jnp.pad(a, ((0, 0), (0, 0), (0, hwp - HW)),
                        constant_values=pad_value)
        return a.reshape(B, nch, 8, m)

    x = prep(outputs, C, 0.0)            # padded logits contribute 0 everywhere
    xd = prep(outputs_dist, C, 0.0)
    lab = prep(y, 1, -1.0)               # -1: one-hot == 0 and L1 weight == 0
    ydp = prep(y_dist, 1, 0.0)

    n_t = m // tl
    # TODO(synk): for B == 1 on v7x both TensorCores could be used by splitting
    # the spatial tile axis into an extra parallel axis; not done here.
    stats = pl.pallas_call(
        _loss_stats_kernel,
        out_shape=jax.ShapeDtypeStruct((B, 1, 4), jnp.float32),
        grid_spec=pltpu.PrefetchScalarGridSpec(
            num_scalar_prefetch=0,
            grid=(B, n_t),
            in_specs=[pl.BlockSpec((1, C, 8, tl), lambda b, i: (b, 0, 0, i)),
                      pl.BlockSpec((1, C, 8, tl), lambda b, i: (b, 0, 0, i)),
                      pl.BlockSpec((1, 1, 8, tl), lambda b, i: (b, 0, 0, i)),
                      pl.BlockSpec((1, 1, 8, tl), lambda b, i: (b, 0, 0, i))],
            out_specs=pl.BlockSpec((1, 1, 4), lambda b, i: (b, 0, 0)),
            scratch_shapes=[pltpu.VMEM((C, 8, 1), jnp.float32),   # inter
                            pltpu.VMEM((C, 8, 1), jnp.float32),   # pred
                            pltpu.VMEM((C, 8, 1), jnp.float32),   # gt
                            pltpu.VMEM((1, 8, 1), jnp.float32),   # ce
                            pltpu.VMEM((1, 8, 1), jnp.float32),   # wnum
                            pltpu.VMEM((1, 8, 1), jnp.float32)]), # msum
        compiler_params=pltpu.CompilerParams(
            dimension_semantics=("parallel", "arbitrary"),
            vmem_limit_bytes=_VMEM_LIMIT),
    )(x, xd, lab, ydp)

    dice_sum = stats[:, 0, 0]
    ce_sum = stats[:, 0, 1]
    wnum = stats[:, 0, 2]
    msum = stats[:, 0, 3]

    loss_dice = jnp.sum(dice_sum) / (B * C)      # mean over (batch, channel)
    loss_ce = jnp.sum(ce_sum) / (B * HW)         # CrossEntropyLoss 'mean'
    loss_dice_ce = loss_dice + loss_ce

    msum_t = jnp.sum(msum)
    wnum_t = jnp.sum(wnum)
    loss_dist = jnp.where(msum_t == 0.0, 0.0,
                          wnum_t / jnp.where(msum_t == 0.0, 1.0, msum_t))

    return loss_dice_ce + distance_map_weight * loss_dist


# ----------------------------------------------------------------------------
# Pure-JAX reference (brute-force EDT) for a correctness sanity check.
# ----------------------------------------------------------------------------
def _reference_loss(outputs, outputs_dist, y, distance_map_weight):
    B, C, H, W = outputs.shape
    HW = H * W
    x = outputs.reshape(B, C, HW).astype(jnp.float32)
    xd = outputs_dist.reshape(B, C, HW).astype(jnp.float32)
    lab = y.reshape(B, 1, HW).astype(jnp.float32)

    idx = jnp.arange(HW)
    ri = (idx // W).astype(jnp.float32)
    ci = (idx % W).astype(jnp.float32)
    d2 = (ri[:, None] - ri[None, :]) ** 2 + (ci[:, None] - ci[None, :]) ** 2
    pen = jnp.where(lab[:, 0, :] != 0, _BIG, 0.0)               # (B, HW)
    dmin = jnp.min(d2[None, :, :] + pen[:, None, :], axis=-1)    # (B, HW)
    yd = jnp.sqrt(dmin)[:, None, :]                              # (B, 1, HW)

    onehot = (lab == jnp.arange(C, dtype=jnp.float32)[None, :, None]).astype(jnp.float32)
    inter = jnp.sum(onehot * x, axis=2)
    pred = jnp.sum(x, axis=2)
    gt = jnp.sum(onehot, axis=2)
    dice = 1.0 - (2.0 * inter + _SMOOTH_NR) / (pred + gt + _SMOOTH_DR)
    loss_dice = jnp.mean(dice)

    mx = jnp.max(x, axis=1, keepdims=True)
    lse = mx[:, 0, :] + jnp.log(jnp.sum(jnp.exp(x - mx), axis=1))
    true_logit = jnp.sum(onehot * x, axis=1)
    loss_ce = jnp.mean(lse - true_logit)

    msum = jnp.sum(lab)
    wnum = jnp.sum(jnp.abs(xd - yd) * lab)
    loss_dist = jnp.where(msum == 0.0, 0.0, wnum / jnp.where(msum == 0.0, 1.0, msum))
    return loss_dice + loss_ce + distance_map_weight * loss_dist


if __name__ == "__main__":
    key = jax.random.PRNGKey(0)
    k1, k2, k3 = jax.random.split(key, 3)
    B, C, H, W = 2, 4, 16, 16

    outputs = jax.random.normal(k1, (B, C, H, W), dtype=jnp.float32)        # logits
    outputs_dist = jax.random.normal(k2, (B, C, H, W), dtype=jnp.float32)   # dist. preds
    y = jax.random.randint(k3, (B, 1, H, W), 0, C).astype(jnp.float32)      # labels 0..C-1

    loss = jax.block_until_ready(fgdtm_loss(outputs, outputs_dist, y, 0.5))
    ref = jax.block_until_ready(_reference_loss(outputs, outputs_dist, y, 0.5))

    assert loss.shape == () and bool(jnp.isfinite(loss))
    assert abs(float(loss) - float(ref)) <= 1e-3 * max(1.0, abs(float(ref))), (
        float(loss), float(ref))
    print("KERNEL_OK")
</pallas_src>

<mosaic_0001>
module attributes {stable_mosaic.version = 11 : i64} {
  func.func @_edt_vert_kernel(%arg0: i32, %arg1: i32, %arg2: memref<1x16x16xf32, #tpu.memory_space<vmem>>, %arg3: memref<1x16x16xf32, #tpu.memory_space<vmem>>) attributes {dimension_semantics = [#tpu.dimension_semantics<parallel>, #tpu.dimension_semantics<parallel>], iteration_bounds = array<i64: 2, 1>, scalar_prefetch = 0 : i64, scratch_operands = 0 : i64, tpu.core_type = #tpu.core_type<tc>, window_params = [{transform_indices = @transform_0, window_bounds = array<i64: 1, 16, 16>}, {transform_indices = @transform_1, window_bounds = array<i64: 1, 16, 16>}]} {
    %cst = arith.constant 3.276800e+04 : f32
    %0 = vector.broadcast %cst : f32 to vector<1x16xf32>
    %c0_i32 = arith.constant 0 : i32
    %c16_i32 = arith.constant 16 : i32
    %1 = arith.addi %c0_i32, %c16_i32 : i32
    %c1_i32 = arith.constant 1 : i32
    %2 = scf.for %arg4 = %c0_i32 to %1 step %c1_i32 iter_args(%arg5 = %0) -> (vector<1x16xf32>)  : i32 {
      %c0 = arith.constant 0 : index
      %5 = arith.index_cast %arg4 : i32 to index
      %c0_5 = arith.constant 0 : index
      %6 = vector.load %arg2[%c0, %5, %c0_5] : memref<1x16x16xf32, #tpu.memory_space<vmem>>, vector<1x1x16xf32>
      %7 = vector.shape_cast %6 : vector<1x1x16xf32> to vector<1x16xf32>
      %cst_6 = arith.constant 0.000000e+00 : f32
      %8 = vector.broadcast %cst_6 : f32 to vector<1x16xf32>
      %9 = arith.cmpf oeq, %7, %8 : vector<1x16xf32>
      %cst_7 = arith.constant 1.000000e+00 : f32
      %10 = vector.broadcast %cst_7 : f32 to vector<1x16xf32>
      %11 = arith.addf %arg5, %10 : vector<1x16xf32>
      %cst_8 = arith.constant 3.276800e+04 : f32
      %12 = vector.broadcast %cst_8 : f32 to vector<1x16xf32>
      %13 = arith.minimumf %11, %12 : vector<1x16xf32>
      %cst_9 = arith.constant 0.000000e+00 : f32
      %14 = vector.broadcast %cst_9 : f32 to vector<1x16xf32>
      %15 = arith.select %9, %14, %13 : vector<1x16xi1>, vector<1x16xf32>
      %c0_10 = arith.constant 0 : index
      %16 = arith.index_cast %arg4 : i32 to index
      %c0_11 = arith.constant 0 : index
      %17 = vector.load %arg3[%c0_10, %16, %c0_11] : memref<1x16x16xf32, #tpu.memory_space<vmem>>, vector<1x1x16xf32>
      %18 = vector.shape_cast %17 : vector<1x1x16xf32> to vector<1x16xf32>
      %19 = vector.shape_cast %15 : vector<1x16xf32> to vector<1x1x16xf32>
      tpu.vector_store %arg3[%c0_10, %16, %c0_11], %19 {strides = array<i32>} : memref<1x16x16xf32, #tpu.memory_space<vmem>>, vector<1x1x16xf32>,
      scf.yield %15 : vector<1x16xf32>
    }
    %c16_i32_0 = arith.constant 16 : i32
    %c0_i32_1 = arith.constant 0 : i32
    %c16_i32_2 = arith.constant 16 : i32
    %3 = arith.addi %c0_i32_1, %c16_i32_2 : i32
    %c1_i32_3 = arith.constant 1 : i32
    %4 = scf.for %arg4 = %c0_i32_1 to %3 step %c1_i32_3 iter_args(%arg5 = %0) -> (vector<1x16xf32>)  : i32 {
      %c15_i32 = arith.constant 15 : i32
      %5 = arith.subi %c15_i32, %arg4 : i32
      %c0 = arith.constant 0 : index
      %6 = arith.index_cast %5 : i32 to index
      %c0_5 = arith.constant 0 : index
      %7 = vector.load %arg2[%c0, %6, %c0_5] : memref<1x16x16xf32, #tpu.memory_space<vmem>>, vector<1x1x16xf32>
      %8 = vector.shape_cast %7 : vector<1x1x16xf32> to vector<1x16xf32>
      %cst_6 = arith.constant 0.000000e+00 : f32
      %9 = vector.broadcast %cst_6 : f32 to vector<1x16xf32>
      %10 = arith.cmpf oeq, %8, %9 : vector<1x16xf32>
      %cst_7 = arith.constant 1.000000e+00 : f32
      %11 = vector.broadcast %cst_7 : f32 to vector<1x16xf32>
      %12 = arith.addf %arg5, %11 : vector<1x16xf32>
      %cst_8 = arith.constant 3.276800e+04 : f32
      %13 = vector.broadcast %cst_8 : f32 to vector<1x16xf32>
      %14 = arith.minimumf %12, %13 : vector<1x16xf32>
      %cst_9 = arith.constant 0.000000e+00 : f32
      %15 = vector.broadcast %cst_9 : f32 to vector<1x16xf32>
      %16 = arith.select %10, %15, %14 : vector<1x16xi1>, vector<1x16xf32>
      %c0_10 = arith.constant 0 : index
      %17 = arith.index_cast %5 : i32 to index
      %c0_11 = arith.constant 0 : index
      %18 = vector.load %arg3[%c0_10, %17, %c0_11] : memref<1x16x16xf32, #tpu.memory_space<vmem>>, vector<1x1x16xf32>
      %19 = vector.shape_cast %18 : vector<1x1x16xf32> to vector<1x16xf32>
      %20 = arith.minimumf %19, %16 : vector<1x16xf32>
      %21 = arith.mulf %20, %20 : vector<1x16xf32>
      %c0_12 = arith.constant 0 : index
      %22 = arith.index_cast %5 : i32 to index
      %c0_13 = arith.constant 0 : index
      %23 = vector.load %arg3[%c0_12, %22, %c0_13] : memref<1x16x16xf32, #tpu.memory_space<vmem>>, vector<1x1x16xf32>
      %24 = vector.shape_cast %23 : vector<1x1x16xf32> to vector<1x16xf32>
      %25 = vector.shape_cast %21 : vector<1x16xf32> to vector<1x1x16xf32>
      tpu.vector_store %arg3[%c0_12, %22, %c0_13], %25 {strides = array<i32>} : memref<1x16x16xf32, #tpu.memory_space<vmem>>, vector<1x1x16xf32>,
      scf.yield %16 : vector<1x16xf32>
    }
    %c16_i32_4 = arith.constant 16 : i32
    return
  }
  func.func @transform_0(%arg0: i32, %arg1: i32) -> (i32, i32, i32) {
    %c0_i32 = arith.constant 0 : i32
    %c0_i32_0 = arith.constant 0 : i32
    return %arg0, %c0_i32, %arg1 : i32, i32, i32
  }
  func.func @transform_1(%arg0: i32, %arg1: i32) -> (i32, i32, i32) {
    %c0_i32 = arith.constant 0 : i32
    %c0_i32_0 = arith.constant 0 : i32
    return %arg0, %c0_i32, %arg1 : i32, i32, i32
  }
}

</mosaic_0001>

<bundles_post_ra>
// kernel: tpu_custom_call.1
= control target key start
LH: loop header
LB: loop body
LE: loop exit
PB: predicated region body
PF: predicated region fallthrough
CT: control target
= control target key end

     0   :  { %6 = vsyncpa [#allocation3], 0  ;;  %s718_s0 = inlined_call_operand.hbm [shape: f32[2,16,16], index: 0, kind: input, shape index: {}]   ;;  %s719_s1 = inlined_call_operand.hbm [shape: f32[2,16,16], index: 1, kind: output, shape index: {}]  }
   0x1   :  { %8 = vsyncpa [#allocation3 + $0x1], 0 }
   0x2   :  { %9 = vsyncpa [#allocation4], 0 }
   0x3   :  { %11 = vsyncpa [#allocation4 + $0x1], 0  ;;  %s587_s6 = smov 0   ;;  %s589_s7 = smov 0  }
   0x4   :  { %s591_s8 = smov 0   ;;  %s593_s9 = smov 0  }
   0x5   :  { %s595_s10 = smov 0   ;;  %s597_s11 = smov 0  }
   0x6 LB: > { %s312_s12 = sadd.s32 4294967295, %s555_s11   ;;  %s313_s13 = sadd.s32 4294967294, %s555_s11   ;;  %s555_s11 = sphi %s597_s11, %s17_s11   ;;  %s551_s10 = sphi %s595_s10, %s728_s10   ;;  %s547_s9 = sphi %s593_s9, %s727_s9   ;;  %s543_s8 = sphi %s591_s8, %s726_s8   ;;  %s539_s7 = sphi %s589_s7, %s725_s7   ;;  %s535_s6 = sphi %s587_s6, %s724_s6  }
   0x7   : > { %s29_s14 = sadd.s32 1, %s551_s10  ;;  %s38_s15 = sadd.s32 1, %s543_s8 }
   0x8   : > { %p31_p0 = scmp.ge.s32.totalorder %s29_s14, 2  ;;  %p45_p1 = scmp.ne.s32.totalorder %s543_s8, %s539_s7 }
   0x9   : > { %p46_p2 = scmp.eq.s32.totalorder %s555_s11, 0  ;;  %p51_p3 = scmp.ne.s32.totalorder %s539_s7, %s535_s6 }
   0xa   : > { %s730_s14 = smov (%p31_p0, %s29_s14), 0  ;;  %p52_p5 = scmp.eq.s32.totalorder %s312_s12, 0 }
   0xb   : > { %p628_p4 = por %p46_p2, %p45_p1  ;;  %s33_s17 = ssub.s32 %s551_s10, %s730_s14 }
   0xc   : > { %p77_p6 = scmp.eq.s32.totalorder %s312_s12, 1  ;;  %p36_p7 = scmp.eq.s32.totalorder %s33_s17, 0 }
   0xd   : > { %p634_p8 = por %p52_p5, %p51_p3  ;;  %p83_p10 = scmp.eq.s32.totalorder %s313_s13, 1 }
   0xe   : > { %p638_p9 = por %p77_p6, %p45_p1  ;;  %p315_p12 = scmp.ge.s32.totalorder %s555_s11, 2 }
   0xf   : > { %s643_s20 = scalar_select %p36_p7, %s543_s8, %s38_s15  }
  0x10   : > { %p645_p11 = por %p83_p10, %p51_p3  ;;  %p341_p13 = scmp.lt.s32.totalorder %s555_s11, 2 }
  0x11   : > { %s103_s22 = sand.u32 1, %s543_s8   ;;  %s327_s24 = sshll.u32 %s551_s10, 4 }
  0x12   : > { %s316_s23 = sshll.u32 %s103_s22, 4  ;;  %s113_s27 = scalar_lea.hbm %s718_s0, %s327_s24 }
  0x13   : > { %s107_s28 = scalar_lea.vmem [#allocation2], %s316_s23  ;;  %s114_s30 = sshll.u32 %s113_s27, 4  ;;  %s115_s30 = int_to_ptr.hbm [resolvable:$true] %s114_s30 }
  0x14   : > { %s116_s29 = sshll.u32 %s107_s28, 4  ;;  %p334_p0 = pnand %p341_p13, %p628_p4  ;;  %s117_s29 = int_to_ptr.vmem [resolvable:$true] %s116_s29 }
  0x15   : > { %p319_p1 = scmp.ge.s32.totalorder %s555_s11, 1  ;;  %s104_s2 = scalar_lea.sflag [#allocation3], %s103_s22 }
  0x16   : > { %s573_s3 = smov 128   ;;  %s574_s4 = smov 8  }
  0x17   : > { %336 = dma.hbm_to_vmem [thread:$0]  (!%p334_p0), %s115_s30, 256, %s117_s29, %s104_s2, %s573_s3, %s573_s3, %s574_s4  }
  0x18   : > { %p124_p2 = scmp.lt.s32.totalorder %s555_s11, 3 }
  0x1a   : > { %p125_p3 = pnand %p319_p1, %p124_p2 }
  0x1b   : > { %s661_s5 = sand.u32 (!%p125_p3), 1, %s539_s7  }
  0x1c   : > { %128 = sbr.rel (%p125_p3) target bundleno = 63 (0x3f), region = 24  ;;  %s320_s12 = sshll.u32 (!%p125_p3), %s661_s5, 4 }
  0x1d   : > { %s131_s13 = scalar_lea.sflag (!%p125_p3), [#allocation3], %s661_s5  ;;  %s665_s15 = scalar_lea.vmem (!%p125_p3), [#allocation2], %s320_s12 }
  0x21   : > { %526 = dma.done.wait (%p634_p8), %s131_s13, 256  }
  0x22   : > { %528 = vsyncadd (%p634_p8), %s131_s13, 4294967040  ;;  %s671_s16 = scalar_lea.vmem [#allocation5], %s320_s12  ;;  %v557_v0 = vmov 32768.0   ;;  %s561_s17 = smov 0  }
  0x23 LB: >> { %s161_s22 = scalar_lea.vmem %s665_s15, %s563_s17 [#allocation2]  ;;  %v164_v1 = vadd.f32 1.0, %v559_v0  ;;  %s167_s23 = scalar_lea.vmem %s671_s16, %s563_s17 [#allocation5]  ;;  %vm168_vm1 = vcmask 122880   ;;  %s563_s17 = sphi %s561_s17, %s159_s17   ;;  %v559_v0 = vphi %v557_v0, %v166_v0  }
  0x24   : >> { %v162_v2 = vld [vmem:[%s161_s22] sm:$0x1]  ;;  %s159_s17 = sadd.s32 1, %s563_s17  }
  0x25   : >> { %vm163_vm0 = vcmp.eq.f32.partialorder %v162_v2, 0.0  ;;  %v165_v3 = vmin.f32 %v164_v1, 32768.0  ;;  %p156_p4 = scmp.ge.s32.totalorder %s159_s17, 16  }
  0x26   : > { %v565_v4 = vmov (%p156_p4), 32768.0   ;;  %s569_s18 = smov (%p156_p4), 0  }
  0x27   : >> { %v166_v0 = vsel %vm163_vm0, 0.0, %v165_v3   ;;  %158 = sbr.rel (!%p156_p4) target bundleno = 35 (0x23), region = 87 }
  0x28   : >> { %169 = vst.msk [vmem:[%s167_s23] sm:$0x1] %vm168_vm1, %v166_v0 }
  0x2c LB: >> { %s177_s24 = ssub.s32 15, %s571_s18  ;;  %v181_v5 = vadd.f32 1.0, %v567_v4  ;;  %s175_s18 = sadd.s32 1, %s571_s18   ;;  %s571_s18 = sphi %s569_s18, %s175_s18   ;;  %v567_v4 = vphi %v565_v4, %v183_v4  }
  0x2d   : >> { %s178_s25 = scalar_lea.vmem %s665_s15, %s177_s24 [#allocation2]  ;;  %s184_s26 = scalar_lea.vmem %s671_s16, %s177_s24 [#allocation5] }
  0x2e   : >> { %v179_v6 = vld [vmem:[%s178_s25] sm:$0x1]  ;;  %v182_v7 = vmin.f32 %v181_v5, 32768.0  ;;  %p172_p5 = scmp.ge.s32.totalorder %s175_s18, 16  }
  0x2f   : >> { %v185_v8 = vld [vmem:[%s184_s26] sm:$0x1]  ;;  %vm180_vm2 = vcmp.eq.f32.partialorder %v179_v6, 0.0  ;;  %s328_s27 = sshll.u32 (%p172_p5), %s547_s9, 4  ;;  %s204_s2 = sshll.u32 (%p172_p5), %s671_s16, 4  ;;  %s205_s2 = int_to_ptr.vmem [resolvable:$true] %s204_s2 }
  0x30   : >> { %v183_v4 = vsel %vm180_vm2, 0.0, %v182_v7   ;;  %s203_s30 = scalar_lea.hbm (%p172_p5), %s719_s1, %s328_s27  ;;  %s191_s4 = scalar_lea.sflag (%p172_p5), [#allocation4], %s661_s5 }
  0x31   : >> { %v186_v9 = vmin.f32 %v185_v8, %v183_v4  ;;  %174 = sbr.rel (!%p172_p5) target bundleno = 44 (0x2c), region = 98  ;;  %s206_s3 = sshll.u32 (%p172_p5), %s203_s30, 4  ;;  %s207_s3 = int_to_ptr.hbm [resolvable:$true] %s206_s3 }
  0x32   : > { %s471_s12 = sshra.s32 (%p172_p5), %s207_s3, 4  ;;  %s477_s9 = scalar_lea.hbm (%p172_p5), %s719_s1, 32  ;;  %s472_s12 = int_to_ptr.hbm [resolvable:$true] %s471_s12 }
  0x33   : >> { %v187_v10 = vmul.f32 %v186_v9, %v186_v9  ;;  %s473_s13 = scalar_lea.hbm (%p172_p5), %s472_s12, 16  ;;  %p478_p10 = scmp.lt.s32.totalorder (%p172_p5), %s472_s12, %s719_s1 }
  0x34   : > { %p474_p6 = scmp.ne.s32.totalorder (%p172_p5), %s472_s12, %s473_s13  ;;  %p479_p13 = scmp.lt.s32.totalorder (%p172_p5), %s477_s9, %s473_s13 }
  0x35   : >> { %189 = vst.msk [vmem:[%s184_s26] sm:$0x1] %vm168_vm1, %v187_v10 }
  0x36   : > { %p475_p7 = pnand %p474_p6, %p638_p9  ;;  %p480_p0 = por %p479_p13, %p478_p10 }
  0x38   : > { %p476_p8 = pneg %p475_p7 }
  0x3a   : > { %p481_p1 = pnand %p480_p0, %p476_p8 }
  0x3c   : > { %484 = shalt.err (!%p481_p1)
}
  0x3d   : > { %s575_s5 = smov 128   ;;  %s576_s16 = smov 8  }
  0x3e   : > { %331 = dma.vmem_to_hbm [thread:$0]  (%p638_p9), %s205_s2, 256, %s207_s3, %s191_s4, %s575_s5, %s575_s5, %s576_s16  }
  0x3f PF: > { %s221_s18 = sand.u32 1, %s535_s6   ;;  %p338_p2 = pnand %p315_p12, %p645_p11 }
  0x40   : > { %s222_s24 = scalar_lea.sflag [#allocation4], %s221_s18 }
  0x41   : > { %p339_p3 = pneg %p338_p2 }
  0x43   : > { %530 = dma.done.wait (%p339_p3), %s222_s24, 256  }
  0x44   : > { %532 = vsyncadd (%p339_p3), %s222_s24, 4294967040  ;;  %s17_s11 = sadd.s32 1, %s555_s11   ;;  %s724_s6 = smov %s539_s7 }
  0x45   : > { %p14_p4 = scmp.ge.s32.totalorder %s17_s11, 4   ;;  %s725_s7 = smov %s543_s8 }
  0x46   : > { %s726_s8 = smov %s643_s20  ;;  %s727_s9 = smov %s551_s10 }
  0x47   : > { %s728_s10 = smov %s730_s14  ;;  %16 = sbr.rel (!%p14_p4) target bundleno = 6 (0x6), region = 109 }
  0x4c   :  { %228 = vsyncpa [#allocation3], 1 }
  0x4d   :  { %230 = vsyncpa [#allocation3 + $0x1], 1 }
  0x4e   :  { %231 = vsyncpa [#allocation4], 1 }
  0x4f   :  { %233 = vsyncpa [#allocation4 + $0x1], 1 }

</bundles_post_ra>
